<compile_context>
chip_gen: v7x
topology: tpu7x:2x2x1
jax: 0.10.0
libtpu: 0.0.40
codegen_flags: <defaults>
</compile_context>

<pallas_src>
import jax
import jax.numpy as jnp
from jax.experimental import pallas as pl
from jax.experimental.pallas import tpu as pltpu


_SMALL_N_CUTOFF = 1024          # below this a plain fused XLA expression wins
_MAX_TILE_LANES = 65536         # cap on the sample-tile width


def _round_up(x: int, m: int) -> int:
    return ((x + m - 1) // m) * m


def _pow_gamma(x, gamma: float):
    """(1 - pt) ** gamma specialized to cheap VPU multiplies for small int gamma."""
    g = float(gamma)
    if g == 1.0:
        return x
    if g == 2.0:
        return x * x
    if g.is_integer() and 0.0 < g <= 4.0:
        r = x
        for _ in range(int(g) - 1):
            r = r * x
        return r
    # generic fallback: clamp base so the log/exp lowering can't produce NaN
    return jnp.power(jnp.maximum(x, 0.0), g)


def _pick_tile(n_pad: int, c: int, in_itemsize: int):
    """Pick the sample-tile width TN and a vmem limit from the chip's VMEM size."""
    try:
        vmem_cap = int(pltpu.get_tpu_info().vmem_capacity_bytes)
    except Exception:
        vmem_cap = 64 * 1024 * 1024          # v7x-safe fallback (smallest gen)
    vmem_limit = min((vmem_cap * 3) // 4, 96 * 1024 * 1024)
    budget = vmem_limit // 2                 # headroom for compiler temporaries

    # Conservative per-lane VMEM footprint (sublane padding to 8 included):
    c_pad = _round_up(c, 8)
    per_lane = (
        2 * (c_pad * in_itemsize + 8 * 4)    # double-buffered logits + targets DMA
        + 6 * c_pad * 4                      # live (C, TN) f32 temporaries
        + 10 * 8 * 4                         # live (1, TN) temporaries
    )
    tn = (budget // per_lane) // 128 * 128
    tn = max(128, min(tn, _MAX_TILE_LANES, n_pad))
    return tn, vmem_limit


def _make_focal_kernel(alpha: float, gamma: float, n: int, tn: int):
    def focal_kernel(logits_ref, targets_ref, out_ref):
        x = logits_ref[...].astype(jnp.float32)   # (C, TN), lanes = samples
        t = targets_ref[...]                       # (1, TN) int32

        # numerically stable logsumexp over the class axis (sublanes)
        m = jnp.max(x, axis=0, keepdims=True)                      # (1, TN)
        shifted = x - m                                            # (C, TN)
        exps = jnp.exp(shifted)                                    # (C, TN)
        sumexp = jnp.sum(exps, axis=0, keepdims=True)              # (1, TN)

        # gather target-class values via a one-hot sublane mask
        rows = jax.lax.broadcasted_iota(jnp.int32, x.shape, 0)
        onehot = rows == t
        tgt_shifted = jnp.sum(jnp.where(onehot, shifted, 0.0),
                              axis=0, keepdims=True)               # (1, TN)
        exp_tgt = jnp.sum(jnp.where(onehot, exps, 0.0),
                          axis=0, keepdims=True)                   # (1, TN)

        # ce = logsumexp - logit[target];  pt reuses exp(shifted) -> no 2nd exp
        ce = jnp.maximum(jnp.log(sumexp) - tgt_shifted, 0.0)
        pt = jnp.minimum(exp_tgt / sumexp, 1.0)
        focal = alpha * _pow_gamma(1.0 - pt, gamma) * ce           # (1, TN)

        # mask padded / out-of-bounds lanes (global sample index >= n)
        lane = jax.lax.broadcasted_iota(jnp.int32, (1, tn), 1)
        gidx = pl.program_id(0) * tn + lane
        focal = jnp.where(gidx < n, focal, 0.0)

        # per-tile partial sum, written as a lane-dense (8,128) block
        partial = jnp.sum(focal)
        row = jax.lax.broadcasted_iota(jnp.int32, (8, 128), 0)
        col = jax.lax.broadcasted_iota(jnp.int32, (8, 128), 1)
        out_ref[...] = jnp.where((row == 0) & (col == 0), partial, 0.0)

    return focal_kernel


def _focal_loss_xla(logits, targets, alpha, gamma):
    """Pure fused XLA path (used for tiny N and as the reference)."""
    x = jnp.asarray(logits, jnp.float32)
    t = jnp.asarray(targets, jnp.int32)
    lse = jax.scipy.special.logsumexp(x, axis=-1)
    tgt = jnp.take_along_axis(x, t[:, None], axis=-1)[:, 0]
    ce = lse - tgt
    pt = jnp.exp(-ce)
    return jnp.mean(alpha * (1.0 - pt) ** gamma * ce)


def focal_loss(logits: jax.Array, targets: jax.Array,
               alpha: float = 0.5, gamma: float = 2.0,
               use_kernel: bool | None = None) -> jax.Array:
    """Mean focal loss. logits: (N, C) float, targets: (N,) int."""
    n, c = logits.shape
    if use_kernel is None:
        use_kernel = n >= _SMALL_N_CUTOFF
    if not use_kernel:
        return _focal_loss_xla(logits, targets, alpha, gamma)

    # keep 16-bit logits narrow over HBM/DMA; upcast anything else to f32
    if logits.dtype in (jnp.float32, jnp.bfloat16, jnp.float16):
        x_nd = logits
    else:
        x_nd = logits.astype(jnp.float32)

    n_pad = _round_up(n, 128)                 # pad to 128 lanes only, never to TN
    tn, vmem_limit = _pick_tile(n_pad, c, x_nd.dtype.itemsize)
    num_tiles = pl.cdiv(n_pad, tn)

    # lane-dense layout: samples on the lane axis (single layout copy; XLA may
    # fold it into the pallas input DMA via allow_input_fusion)
    x = x_nd.T                                                   # (C, N)
    t = jnp.asarray(targets, jnp.int32).reshape(1, n)            # (1, N)
    if n_pad != n:
        x = jnp.pad(x, ((0, 0), (0, n_pad - n)))
        t = jnp.pad(t, ((0, 0), (0, n_pad - n)))

    partials = pl.pallas_call(
        _make_focal_kernel(float(alpha), float(gamma), n, tn),
        out_shape=jax.ShapeDtypeStruct((num_tiles * 8, 128), jnp.float32),
        grid=(num_tiles,),
        in_specs=[
            pl.BlockSpec((c, tn), lambda i: (0, i)),   # logits tile (C, TN)
            pl.BlockSpec((1, tn), lambda i: (0, i)),   # targets tile (1, TN)
        ],
        out_specs=pl.BlockSpec((8, 128), lambda i: (i, 0)),
        compiler_params=pltpu.CompilerParams(
            # NOTE: plain "parallel" may still run on a single TC on v7x; if
            # xprof shows one idle core, switch to core-level semantics.
            dimension_semantics=("parallel",),
            vmem_limit_bytes=vmem_limit,
            allow_input_fusion=[True, True],
        ),
    )(x, t)

    # mean over the real (unpadded) samples: tiny sum of per-tile partials
    return jnp.sum(partials) * (1.0 / n)


if __name__ == "__main__":
    key = jax.random.PRNGKey(0)
    k1, k2, k3, k4 = jax.random.split(key, 4)

    # 1) tiny MRI-style case (16 scans, 4 tumor classes), forced through kernel
    N1, C1 = 16, 4
    logits1 = jax.random.normal(k1, (N1, C1), dtype=jnp.float32)
    targets1 = jax.random.randint(k2, (N1,), 0, C1, dtype=jnp.int32)

    loss1 = focal_loss(logits1, targets1, use_kernel=True)
    jax.block_until_ready(loss1)
    ref1 = _focal_loss_xla(logits1, targets1, 0.5, 2.0)
    assert jnp.allclose(loss1, ref1, atol=1e-5, rtol=1e-5), (loss1, ref1)

    # small-N auto path (pure XLA fast path)
    loss1b = focal_loss(logits1, targets1)
    jax.block_until_ready(loss1b)
    assert jnp.allclose(loss1b, ref1, atol=1e-5, rtol=1e-5), (loss1b, ref1)

    # 2) ragged N (non-multiple of 128), odd class count, bf16 logits over DMA
    N2, C2 = 1000, 5
    logits2 = (3.0 * jax.random.normal(k3, (N2, C2), dtype=jnp.float32)
               ).astype(jnp.bfloat16)
    targets2 = jax.random.randint(k4, (N2,), 0, C2, dtype=jnp.int32)

    loss2 = focal_loss(logits2, targets2, use_kernel=True)
    jax.block_until_ready(loss2)
    ref2 = _focal_loss_xla(logits2.astype(jnp.float32), targets2, 0.5, 2.0)
    assert jnp.allclose(loss2, ref2, atol=1e-5, rtol=1e-5), (loss2, ref2)

    print("KERNEL_OK")
</pallas_src>

<mosaic_0001>
module attributes {stable_mosaic.version = 11 : i64} {
  func.func @focal_kernel(%arg0: i32, %arg1: memref<4x128xf32, #tpu.memory_space<vmem>>, %arg2: memref<1x128xi32, #tpu.memory_space<vmem>>, %arg3: memref<8x128xf32, #tpu.memory_space<vmem>>) attributes {dimension_semantics = [#tpu.dimension_semantics<parallel>], iteration_bounds = array<i64: 1>, scalar_prefetch = 0 : i64, scratch_operands = 0 : i64, tpu.core_type = #tpu.core_type<tc>, window_params = [{transform_indices = @transform_0, window_bounds = array<i64: 4, 128>}, {transform_indices = @transform_1, window_bounds = array<i64: 1, 128>}, {transform_indices = @transform_2, window_bounds = array<i64: 8, 128>}]} {
    %c0 = arith.constant 0 : index
    %c0_0 = arith.constant 0 : index
    %0 = vector.load %arg1[%c0, %c0_0] : memref<4x128xf32, #tpu.memory_space<vmem>>, vector<4x128xf32>
    %c0_1 = arith.constant 0 : index
    %c0_2 = arith.constant 0 : index
    %1 = vector.load %arg2[%c0_1, %c0_2] : memref<1x128xi32, #tpu.memory_space<vmem>>, vector<1x128xi32>
    %cst = arith.constant dense<0xFF800000> : vector<128xf32>
    %2 = vector.multi_reduction <maximumf>, %0, %cst [0] : vector<4x128xf32> to vector<128xf32>
    %3 = vector.shape_cast %2 : vector<128xf32> to vector<1x128xf32>
    %4 = vector.broadcast %3 : vector<1x128xf32> to vector<4x128xf32>
    %5 = arith.subf %0, %4 : vector<4x128xf32>
    %6 = math.exp %5 : vector<4x128xf32>
    %cst_3 = arith.constant dense<0.000000e+00> : vector<128xf32>
    %7 = vector.multi_reduction <add>, %6, %cst_3 [0] : vector<4x128xf32> to vector<128xf32>
    %8 = vector.shape_cast %7 : vector<128xf32> to vector<1x128xf32>
    %9 = tpu.iota {dimensions = array<i32: 0>} : vector<4x128xi32>
    %10 = vector.broadcast %1 : vector<1x128xi32> to vector<4x128xi32>
    %11 = arith.cmpi eq, %9, %10 : vector<4x128xi32>
    %cst_4 = arith.constant 0.000000e+00 : f32
    %12 = vector.broadcast %cst_4 : f32 to vector<4x128xf32>
    %13 = arith.select %11, %5, %12 : vector<4x128xi1>, vector<4x128xf32>
    %cst_5 = arith.constant dense<0.000000e+00> : vector<128xf32>
    %14 = vector.multi_reduction <add>, %13, %cst_5 [0] : vector<4x128xf32> to vector<128xf32>
    %15 = vector.shape_cast %14 : vector<128xf32> to vector<1x128xf32>
    %cst_6 = arith.constant 0.000000e+00 : f32
    %16 = vector.broadcast %cst_6 : f32 to vector<4x128xf32>
    %17 = arith.select %11, %6, %16 : vector<4x128xi1>, vector<4x128xf32>
    %cst_7 = arith.constant dense<0.000000e+00> : vector<128xf32>
    %18 = vector.multi_reduction <add>, %17, %cst_7 [0] : vector<4x128xf32> to vector<128xf32>
    %19 = vector.shape_cast %18 : vector<128xf32> to vector<1x128xf32>
    %20 = math.log %8 : vector<1x128xf32>
    %21 = arith.subf %20, %15 : vector<1x128xf32>
    %cst_8 = arith.constant 0.000000e+00 : f32
    %22 = vector.broadcast %cst_8 : f32 to vector<1x128xf32>
    %23 = arith.maximumf %21, %22 : vector<1x128xf32>
    %24 = arith.divf %19, %8 : vector<1x128xf32>
    %cst_9 = arith.constant 1.000000e+00 : f32
    %25 = vector.broadcast %cst_9 : f32 to vector<1x128xf32>
    %26 = arith.minimumf %24, %25 : vector<1x128xf32>
    %cst_10 = arith.constant 1.000000e+00 : f32
    %27 = vector.broadcast %cst_10 : f32 to vector<1x128xf32>
    %28 = arith.subf %27, %26 : vector<1x128xf32>
    %29 = arith.mulf %28, %28 : vector<1x128xf32>
    %cst_11 = arith.constant 5.000000e-01 : f32
    %30 = vector.broadcast %cst_11 : f32 to vector<1x128xf32>
    %31 = arith.mulf %30, %29 : vector<1x128xf32>
    %32 = arith.mulf %31, %23 : vector<1x128xf32>
    %33 = tpu.iota {dimensions = array<i32: 1>} : vector<1x128xi32>
    %c128_i32 = arith.constant 128 : i32
    %34 = arith.muli %arg0, %c128_i32 : i32
    %35 = vector.broadcast %34 : i32 to vector<1x128xi32>
    %36 = arith.addi %35, %33 : vector<1x128xi32>
    %c16_i32 = arith.constant 16 : i32
    %37 = vector.broadcast %c16_i32 : i32 to vector<1x128xi32>
    %38 = arith.cmpi slt, %36, %37 : vector<1x128xi32>
    %cst_12 = arith.constant 0.000000e+00 : f32
    %39 = vector.broadcast %cst_12 : f32 to vector<1x128xf32>
    %40 = arith.select %38, %32, %39 : vector<1x128xi1>, vector<1x128xf32>
    %41 = vector.shape_cast %40 : vector<1x128xf32> to vector<1x1x128xf32>
    %cst_13 = arith.constant dense<0.000000e+00> : vector<1xf32>
    %42 = vector.multi_reduction <add>, %41, %cst_13 [1, 2] : vector<1x1x128xf32> to vector<1xf32>
    %43 = vector.shape_cast %42 : vector<1xf32> to vector<1x1x1xf32>
    %44 = vector.extract %43[0, 0, 0] : f32 from vector<1x1x1xf32>
    %45 = tpu.iota {dimensions = array<i32: 0>} : vector<8x128xi32>
    %46 = tpu.iota {dimensions = array<i32: 1>} : vector<8x128xi32>
    %c0_i32 = arith.constant 0 : i32
    %47 = vector.broadcast %c0_i32 : i32 to vector<8x128xi32>
    %48 = arith.cmpi eq, %45, %47 : vector<8x128xi32>
    %c0_i32_14 = arith.constant 0 : i32
    %49 = vector.broadcast %c0_i32_14 : i32 to vector<8x128xi32>
    %50 = arith.cmpi eq, %46, %49 : vector<8x128xi32>
    %51 = arith.andi %48, %50 : vector<8x128xi1>
    %cst_15 = arith.constant 0.000000e+00 : f32
    %52 = vector.broadcast %44 : f32 to vector<8x128xf32>
    %53 = vector.broadcast %cst_15 : f32 to vector<8x128xf32>
    %54 = arith.select %51, %52, %53 : vector<8x128xi1>, vector<8x128xf32>
    %c0_16 = arith.constant 0 : index
    %c0_17 = arith.constant 0 : index
    %55 = vector.load %arg3[%c0_16, %c0_17] : memref<8x128xf32, #tpu.memory_space<vmem>>, vector<8x128xf32>
    tpu.vector_store %arg3[%c0_16, %c0_17], %54 {strides = array<i32>} : memref<8x128xf32, #tpu.memory_space<vmem>>, vector<8x128xf32>,
    return
  }
  func.func @transform_0(%arg0: i32) -> (i32, i32) {
    %c0_i32 = arith.constant 0 : i32
    %c0_i32_0 = arith.constant 0 : i32
    return %c0_i32, %arg0 : i32, i32
  }
  func.func @transform_1(%arg0: i32) -> (i32, i32) {
    %c0_i32 = arith.constant 0 : i32
    %c0_i32_0 = arith.constant 0 : i32
    return %c0_i32, %arg0 : i32, i32
  }
  func.func @transform_2(%arg0: i32) -> (i32, i32) {
    %c0_i32 = arith.constant 0 : i32
    %c0_i32_0 = arith.constant 0 : i32
    return %arg0, %c0_i32 : i32, i32
  }
}

</mosaic_0001>

<bundles_post_ra>
// kernel: tpu_custom_call.1
= control target key start
LH: loop header
LB: loop body
LE: loop exit
PB: predicated region body
PF: predicated region fallthrough
CT: control target
= control target key end

     0   :  { %7 = vsyncpa [#allocation3], 0  ;;  %s224_s0 = inlined_call_operand.hbm [shape: f32[4,128], index: 0, kind: input, shape index: {}]   ;;  %s225_s1 = inlined_call_operand.vmem [shape: s32[1,128], index: 1, kind: input, shape index: {}]   ;;  %s226_s2 = inlined_call_operand.hbm [shape: f32[8,128], index: 2, kind: output, shape index: {}]  }
   0x1   :  { %8 = vsyncpa [#allocation4], 0  ;;  %s176_s9 = smov [#allocation2]   ;;  %s128_s13 = scalar_lea.hbm %s224_s0, 64 }
   0x2   :  { %s15_s10 = sshll.u32 %s176_s9, 4  ;;  %p129_p0 = scmp.ne.s32.totalorder %s224_s0, %s128_s13  ;;  %s16_s10 = int_to_ptr.vmem [resolvable:$true] %s15_s10 }
   0x3   :  { %p132_p1 = scmp.lt.u32.totalorder %s128_s13, %s224_s0 }
   0x5   :  { %p134_p2 = pnand %p132_p1, %p129_p0 }
   0x7   :  { %137 = shalt.err (!%p134_p2)
}
   0x8   :  { %s138_s18 = scalar_lea.vmem %s16_s10, 64  ;;  %p143_p4 = scmp.lt.s32.totalorder %s16_s10, %s16_s10 }
   0x9   :  { %p139_p3 = scmp.ne.s32.totalorder %s16_s10, %s138_s18  ;;  %p144_p5 = scmp.lt.s32.totalorder %s138_s18, %s138_s18 }
   0xb   :  { %p145_p6 = por %p144_p5, %p143_p4 }
   0xd   :  { %p146_p7 = pnand %p145_p6, %p139_p3 }
   0xf   :  { %149 = shalt.err (!%p146_p7)
}
  0x10   :  { %18 = dma.hbm_to_vmem [thread:$0]  %s224_s0, 64, %s16_s10, [#allocation3]  }
  0x11   :  { %172 = dma.done.wait [#allocation3], 64  }
  0x12   :  { %173 = vsyncadd [#allocation3], 4294967232  ;;  %vm26_vm0 = vcmask 1043456   ;;  %v24_v0 = vld [vmem:[#allocation2] sm:$0xf]  ;;  %v44_v10 = vlaneseq  ;;  %vm85_vm3 = vcmask 1040384  }
  0x13   :  { %v27_v1 = vsel %vm26_vm0, %v24_v0, -inf  ;;  %v117_v12 = vld [vmem:[%s225_s1] ss:$0 sm:$0xff]  ;;  %s177_s0 = smov [#allocation5]  }
  0x14   :  { %v28_v2 = vrot.slane %v27_v1, 4  ;;  %v45_v11 = vshrl.u32 %v44_v10, 7  ;;  %v79_v44 = vand.u32 127, %v44_v10  ;;  %s108_s1 = sshll.u32 %s177_s0, 4  ;;  %s109_s1 = int_to_ptr.vmem [resolvable:$true] %s108_s1 }
  0x15   :  { %s150_s24 = scalar_lea.vmem %s109_s1, 128  ;;  %p155_p9 = scmp.lt.s32.totalorder %s109_s1, %s109_s1 }
  0x16   :  { %v29_v3 = vmax.f32 %v27_v1, %v28_v2  ;;  %vm50_vm1 = vcmp.eq.s32.totalorder %v45_v11, %v117_v12  ;;  %vm83_vm2 = vcmp.lt.s32.totalorder %v79_v44, 16  ;;  %vm96_vm4 = vcmp.eq.s32.totalorder %v45_v11, 0  ;;  %p151_p8 = scmp.ne.s32.totalorder %s109_s1, %s150_s24  ;;  %p156_p10 = scmp.lt.s32.totalorder %s150_s24, %s150_s24 }
  0x17   :  { %vm97_vm5 = vcmp.eq.s32.totalorder %v79_v44, 0 }
  0x18   :  { %v30_v4 = vrot.slane %v29_v3, 2  ;;  %vm98_vm6 = vmand %vm96_vm4, %vm97_vm5  ;;  %p157_p11 = por %p156_p10, %p155_p9 }
  0x1a   :  { %v31_v5 = vmax.f32 %v29_v3, %v30_v4  ;;  %p158_p12 = pnand %p157_p11, %p151_p8 }
  0x1c   :  { %v32_v6 = vrot.slane %v31_v5, 1 }
  0x1e   :  { %v33_v7 = vmax.f32 %v31_v5, %v32_v6 }
  0x20   :  { %v34_v8 = vsub.f32 %v24_v0, %v33_v7 }
  0x22   :  { %v35_v9 = vmul.f32 1.442695, %v34_v8  ;;  %v51_v13 = vsel %vm50_vm1, %v34_v8, 0.0 }
  0x23   :  { %v52_v16 = vsel %vm26_vm0, %v51_v13, 0.0 }
  0x24   :  { %122 = vpow2.f32 %v35_v9  ;;  %v53_v22 = vrot.slane %v52_v16, 4 }
  0x26   :  { %v54_v26 = vadd.f32 %v53_v22, %v52_v16 }
  0x28   :  { %v55_v30 = vrot.slane %v54_v26, 2 }
  0x2a   :  { %v56_v32 = vadd.f32 %v55_v30, %v54_v26 }
  0x2c   :  { %v57_v34 = vrot.slane %v56_v32, 1 }
  0x2e   :  { %v123_v14 = vpop.eup %122  ;;  %v58_v37 = vadd.f32 %v57_v34, %v56_v32 }
  0x2f   :  { %v37_v15 = vsel %vm26_vm0, %v123_v14, 0.0  ;;  %v59_v17 = vsel %vm50_vm1, %v123_v14, 0.0 }
  0x30   :  { %v38_v18 = vrot.slane %v37_v15, 4  ;;  %v60_v19 = vsel %vm26_vm0, %v59_v17, 0.0 }
  0x31   :  { %v61_v20 = vrot.slane %v60_v19, 4 }
  0x32   :  { %v39_v21 = vadd.f32 %v38_v18, %v37_v15 }
  0x33   :  { %v62_v24 = vadd.f32 %v61_v20, %v60_v19 }
  0x34   :  { %v40_v23 = vrot.slane %v39_v21, 2 }
  0x35   :  { %v63_v28 = vrot.slane %v62_v24, 2 }
  0x36   :  { %v41_v25 = vadd.f32 %v40_v23, %v39_v21 }
  0x37   :  { %v64_v31 = vadd.f32 %v63_v28, %v62_v24 }
  0x38   :  { %v42_v27 = vrot.slane %v41_v25, 1 }
  0x39   :  { %v65_v33 = vrot.slane %v64_v31, 1 }
  0x3a   :  { %v43_v29 = vadd.f32 %v42_v27, %v41_v25 }
  0x3b   :  { %v66_v35 = vadd.f32 %v65_v33, %v64_v31 }
  0x3c   :  { %124 = vlog2.f32 %v43_v29 }
  0x3d   :  { %126 = vrcp.f32 %v43_v29 }
  0x46   :  { %v125_v36 = vpop.eup %124 }
  0x47   :  { %v127_v38 = vpop.eup %126  ;;  %v68_v39 = vmul.f32 0.6931472, %v125_v36 }
  0x48   :  { %v72_v40 = vmul.f32 %v127_v38, %v66_v35 }
  0x49   :  { %v69_v41 = vsub.f32 %v68_v39, %v58_v37 }
  0x4a   :  { %v73_v42 = vmin.f32 %v72_v40, 1.0 }
  0x4b   :  { %v70_v45 = vmax.f32 %v69_v41, 0.0 }
  0x4c   :  { %v74_v43 = vsub.f32 1.0, %v73_v42 }
  0x4e   :  { %v75_v46 = vmul.f32 %v74_v43, %v74_v43 }
  0x50   :  { %v76_v47 = vmul.f32 0.5, %v75_v46 }
  0x52   :  { %v77_v48 = vmul.f32 %v76_v47, %v70_v45 }
  0x54   :  { %v84_v49 = vsel %vm83_vm2, %v77_v48, 0.0 }
  0x55   :  { %v86_v50 = vsel %vm85_vm3, %v84_v49, 0.0 }
  0x56   :  { %87 = vadd.xlane.f32.xlu0 %v86_v50 }
  0xe3   :  { %v88_v51 = vpop.xlane.xlu0 %87 }
  0xe4   :  { %v89_v52 = vrot.slane %v88_v51, 4 }
  0xe6   :  { %v90_v53 = vadd.f32 %v89_v52, %v88_v51 }
  0xe8   :  { %v91_v54 = vrot.slane %v90_v53, 2 }
  0xea   :  { %v92_v55 = vadd.f32 %v91_v54, %v90_v53 }
  0xec   :  { %v93_v56 = vrot.slane %v92_v55, 1 }
  0xee   :  { %v94_v57 = vadd.f32 %v93_v56, %v92_v55 }
  0xf0   :  { %118 = vpush %v94_v57 }
 0x121   :  { %s119_s23 = spop %118 }
 0x122   :  { %v99_v58 = vstv %s119_s23 }
 0x123   :  { %v100_v59 = vsel %vm98_vm6, %v99_v58, 0.0 }
 0x124   :  { %101 = vst [vmem:[#allocation5] sm:$0xff] %v100_v59 }
 0x125   :  { %161 = shalt.err (!%p158_p12)
}
 0x126   :  { %s162_s27 = scalar_lea.hbm %s226_s2, 128 }
 0x127   :  { %p163_p13 = scmp.ne.s32.totalorder %s226_s2, %s162_s27  ;;  %p166_p0 = scmp.lt.u32.totalorder %s162_s27, %s226_s2 }
 0x129   :  { %p168_p1 = pnand %p166_p0, %p163_p13 }
 0x12b   :  { %171 = shalt.err (!%p168_p1)
}
 0x12c   :  { %111 = dma.vmem_to_hbm [thread:$0]  %s109_s1, 128, %s226_s2, [#allocation4]  }
 0x12d   :  { %174 = dma.done.wait [#allocation4], 128  }
 0x12e   :  { %175 = vsyncadd [#allocation4], 4294967168 }
 0x12f   :  { %115 = vsyncpa [#allocation3], 1 }
 0x130   :  { %116 = vsyncpa [#allocation4], 1 }

</bundles_post_ra>
